<compile_context>
chip_gen: v5e
topology: v5e:2x2
jax: 0.10.0
libtpu: 0.0.40
codegen_flags: <defaults>
</compile_context>

<pallas_src>
import functools

import jax
import jax.numpy as jnp
from jax.experimental import pallas as pl
from jax.experimental.pallas import tpu as pltpu


def _round_up(x, m):
    return ((x + m - 1) // m) * m


def _vmem_budget_bytes():
    # 75% of physical per-TC VMEM (v7x: 64 MiB/TC, v5e/v6e: 128 MiB); leave
    # headroom for compiler-internal scratch.  Conservative fallback if the
    # hardware query is unavailable.
    try:
        cap = int(getattr(pltpu.get_tpu_info(), "vmem_capacity_bytes", 0))
    except Exception:
        cap = 0
    if cap <= 0:
        cap = 64 * 1024 * 1024
    return (cap * 3) // 4


def fuse_router_weights(w_route, w_noise, compute_dtype=jnp.bfloat16):
    """Build the fused (H, 2*E_pad) weight [route | noise], lane-padded to 128.

    Call ONCE at parameter-init time and pass the result to noisy_topk_router
    so the transpose / pad / concat is not paid on every forward."""
    E, H = w_route.shape
    e_pad = _round_up(E, 128)
    wr = jnp.transpose(w_route).astype(compute_dtype)   # (H, E)
    wn = jnp.transpose(w_noise).astype(compute_dtype)   # (H, E)
    if e_pad != E:
        wr = jnp.pad(wr, ((0, 0), (0, e_pad - E)))
        wn = jnp.pad(wn, ((0, 0), (0, e_pad - E)))
    return jnp.concatenate([wr, wn], axis=1)            # (H, 2*E_pad)


def _router_kernel(x_ref, w_ref, noise_ref, out_ref, *, e_pad):
    # x: (TM, H) compute dtype; w: (H, 2*E_pad) fused [route | noise] weight.
    # One MXU pass yields both halves; the split column E_pad is a multiple of
    # 128 lanes so both slices are layout-free.
    fused = jnp.dot(x_ref[...], w_ref[...],
                    preferred_element_type=jnp.float32)       # (TM, 2*E_pad) f32
    logits = fused[:, :e_pad]                                 # (TM, E_pad)
    noise_logits = fused[:, e_pad:]                           # (TM, E_pad)
    noisy = logits + noise_ref[...].astype(jnp.float32) * jax.nn.softplus(noise_logits)
    out_ref[...] = noisy.astype(out_ref.dtype)


def noisy_topk_router(hidden_states, w_route, w_noise, noise, *,
                      w_fused=None, tm=1024, use_pallas=None):
    """NoisyTopkRouter.forward.

    hidden_states: (B, S, H); w_route / w_noise: (E, H) torch nn.Linear layout
    (bias=False); noise: (B, S, E) standard-normal draws; w_fused: optional
    pre-fused weight from fuse_router_weights.  Returns (B, S, E)."""
    B, S, H = hidden_states.shape
    E = w_route.shape[0]
    M = B * S
    out_dtype = hidden_states.dtype
    # HBM-bound kernel: halve the dominant x stream by computing in bf16 when
    # the input is f32 (MXU still accumulates f32).  Explicit precision choice.
    compute_dtype = jnp.bfloat16 if out_dtype == jnp.float32 else out_dtype
    e_pad = _round_up(E, 128)

    # Small-problem fast path: sub-tile problems are dominated by pallas_call
    # launch/DMA setup; let XLA fuse them.
    if use_pallas is None:
        use_pallas = M * H >= (1 << 18)
    if not use_pallas:
        x = hidden_states.astype(compute_dtype)
        logits = jnp.einsum("bsh,eh->bse", x, w_route.astype(compute_dtype),
                            preferred_element_type=jnp.float32)
        noise_logits = jnp.einsum("bsh,eh->bse", x, w_noise.astype(compute_dtype),
                                  preferred_element_type=jnp.float32)
        out = logits + noise.astype(jnp.float32) * jax.nn.softplus(noise_logits)
        return out.astype(out_dtype)

    if w_fused is None:
        # Fallback only; hoist this out of the hot path in real usage.
        w_fused = fuse_router_weights(w_route, w_noise, compute_dtype)

    x2d = hidden_states.reshape(M, H).astype(compute_dtype)
    n2d = noise.reshape(M, E)                        # native dtype; cast in-kernel
    if e_pad != E:
        n2d = jnp.pad(n2d, ((0, 0), (0, e_pad - E)))

    # Size the token tile from the per-TC VMEM budget (double-buffered x /
    # noise / out streams + double-buffered resident weight).
    budget = _vmem_budget_bytes()
    x_bytes = jnp.dtype(compute_dtype).itemsize
    n_bytes = jnp.dtype(n2d.dtype).itemsize
    o_bytes = jnp.dtype(out_dtype).itemsize
    w_vmem = 2 * H * 2 * e_pad * jnp.dtype(w_fused.dtype).itemsize

    def _fits(t):
        return 2 * t * H * x_bytes + 2 * t * e_pad * (n_bytes + o_bytes) + w_vmem <= budget

    tm = max(8, min(_round_up(tm, 8), _round_up(M, 8)))
    while tm > 8 and not _fits(tm):
        tm = max(8, _round_up(tm // 2, 8))

    Mp = _round_up(M, tm)
    if Mp != M:                                      # ragged tail -> zero-pad tokens
        x2d = jnp.pad(x2d, ((0, Mp - M), (0, 0)))
        n2d = jnp.pad(n2d, ((0, Mp - M), (0, 0)))

    out = pl.pallas_call(
        functools.partial(_router_kernel, e_pad=e_pad),
        out_shape=jax.ShapeDtypeStruct((Mp, e_pad), out_dtype),
        grid=(Mp // tm,),
        in_specs=[
            pl.BlockSpec((tm, H), lambda i: (i, 0)),           # x tile (streamed)
            pl.BlockSpec((H, 2 * e_pad), lambda i: (0, 0)),    # fused weight (resident)
            pl.BlockSpec((tm, e_pad), lambda i: (i, 0)),       # noise tile (lane-dense)
        ],
        out_specs=pl.BlockSpec((tm, e_pad), lambda i: (i, 0)), # lane-dense output
        compiler_params=pltpu.CompilerParams(
            dimension_semantics=("parallel",),                 # megacore sharding on v7x
            vmem_limit_bytes=budget,
        ),
    )(x2d, w_fused, n2d)

    return out[:M, :E].reshape(B, S, E)


def _reference(hidden_states, w_route, w_noise, noise):
    logits = jnp.einsum("bsh,eh->bse", hidden_states, w_route)
    noise_logits = jnp.einsum("bsh,eh->bse", hidden_states, w_noise)
    return logits + noise * jax.nn.softplus(noise_logits)


if __name__ == "__main__":
    B, S, H, E = 2, 8, 32, 8  # batch, seq, hidden_dim, num_experts

    key = jax.random.PRNGKey(0)
    k_x, k_wr, k_wn, k_noise = jax.random.split(key, 4)

    hidden_states = jax.random.normal(k_x, (B, S, H), dtype=jnp.float32)
    # Deterministic Linear weights (shape (num_experts, hidden_dim), no bias).
    bound = 1.0 / (H ** 0.5)
    w_route = jax.random.uniform(k_wr, (E, H), minval=-bound, maxval=bound,
                                 dtype=jnp.float32)
    w_noise = jax.random.uniform(k_wn, (E, H), minval=-bound, maxval=bound,
                                 dtype=jnp.float32)
    noise = jax.random.normal(k_noise, (B, S, E), dtype=jnp.float32)

    # Fuse + pad the router weights ONCE (parameter-init time in real usage).
    w_fused = fuse_router_weights(w_route, w_noise, jnp.bfloat16)

    # bf16 compute path -> modest tolerance against the f32 reference.
    tol = dict(atol=3e-2, rtol=3e-2)

    out = noisy_topk_router(hidden_states, w_route, w_noise, noise,
                            w_fused=w_fused, use_pallas=True)
    out = jax.block_until_ready(out)
    ref = _reference(hidden_states, w_route, w_noise, noise)
    assert out.shape == (B, S, E)
    assert jnp.allclose(out, ref, **tol), "mismatch vs reference"

    # Ragged-M path (M=14 not a tile multiple) AND a multi-step grid (tm=8 -> 2 steps).
    hs2 = jax.random.normal(k_x, (2, 7, H), dtype=jnp.float32)
    noise2 = jax.random.normal(k_noise, (2, 7, E), dtype=jnp.float32)
    out2 = jax.block_until_ready(
        noisy_topk_router(hs2, w_route, w_noise, noise2, w_fused=w_fused,
                          tm=8, use_pallas=True))
    ref2 = _reference(hs2, w_route, w_noise, noise2)
    assert out2.shape == (2, 7, E)
    assert jnp.allclose(out2, ref2, **tol), "mismatch (ragged M)"

    # Small-problem fast path (plain XLA fusion, no pallas_call).
    out3 = jax.block_until_ready(
        noisy_topk_router(hidden_states, w_route, w_noise, noise))
    assert jnp.allclose(out3, ref, **tol), "mismatch (fast path)"

    print("KERNEL_OK")
</pallas_src>

<mosaic_0001>
module attributes {stable_mosaic.version = 11 : i64} {
  func.func @_router_kernel(%arg0: i32, %arg1: memref<16x32xbf16, #tpu.memory_space<vmem>>, %arg2: memref<32x256xbf16, #tpu.memory_space<vmem>>, %arg3: memref<16x128xf32, #tpu.memory_space<vmem>>, %arg4: memref<16x128xf32, #tpu.memory_space<vmem>>) attributes {dimension_semantics = [#tpu.dimension_semantics<parallel>], iteration_bounds = array<i64: 1>, scalar_prefetch = 0 : i64, scratch_operands = 0 : i64, tpu.core_type = #tpu.core_type<tc>, window_params = [{transform_indices = @transform_0, window_bounds = array<i64: 16, 32>}, {pipeline_mode = #tpu.pipeline_mode<synchronous>, transform_indices = @transform_1, window_bounds = array<i64: 32, 256>}, {transform_indices = @transform_2, window_bounds = array<i64: 16, 128>}, {transform_indices = @transform_3, window_bounds = array<i64: 16, 128>}]} {
    %c0 = arith.constant 0 : index
    %c0_0 = arith.constant 0 : index
    %0 = vector.load %arg1[%c0, %c0_0] : memref<16x32xbf16, #tpu.memory_space<vmem>>, vector<16x32xbf16>
    %c0_1 = arith.constant 0 : index
    %c0_2 = arith.constant 0 : index
    %1 = vector.load %arg2[%c0_1, %c0_2] : memref<32x256xbf16, #tpu.memory_space<vmem>>, vector<32x256xbf16>
    %cst = arith.constant dense<0.000000e+00> : vector<16x256xf32>
    %2 = tpu.matmul %0, %1, %cst {dimension_numbers = #tpu.dot_dimension_numbers<[1], [0], [0], [1], [0, 0, 1, 1], [], []>} : vector<16x32xbf16>, vector<32x256xbf16>, vector<16x256xf32> -> vector<16x256xf32>
    %3 = vector.extract_strided_slice %2 {offsets = [0, 0], sizes = [16, 128], strides = [1, 1]} : vector<16x256xf32> to vector<16x128xf32>
    %4 = vector.extract_strided_slice %2 {offsets = [0, 128], sizes = [16, 128], strides = [1, 1]} : vector<16x256xf32> to vector<16x128xf32>
    %c0_3 = arith.constant 0 : index
    %c0_4 = arith.constant 0 : index
    %5 = vector.load %arg3[%c0_3, %c0_4] : memref<16x128xf32, #tpu.memory_space<vmem>>, vector<16x128xf32>
    %cst_5 = arith.constant 0.000000e+00 : f32
    %6 = vector.broadcast %cst_5 : f32 to vector<16x128xf32>
    %7 = arith.maximumf %4, %6 : vector<16x128xf32>
    %8 = vector.broadcast %cst_5 : f32 to vector<16x128xf32>
    %9 = arith.subf %4, %8 : vector<16x128xf32>
    %10 = arith.cmpf one, %9, %9 : vector<16x128xf32>
    %11 = vector.broadcast %cst_5 : f32 to vector<16x128xf32>
    %12 = arith.addf %4, %11 : vector<16x128xf32>
    %13 = math.absf %9 : vector<16x128xf32>
    %cst_6 = arith.constant 0.000000e+00 : f32
    %14 = vector.broadcast %cst_6 : f32 to vector<16x128xf32>
    %15 = arith.subf %14, %13 : vector<16x128xf32>
    %16 = math.exp %15 : vector<16x128xf32>
    %17 = math.log1p %16 : vector<16x128xf32>
    %18 = arith.addf %7, %17 : vector<16x128xf32>
    %19 = arith.select %10, %12, %18 : vector<16x128xi1>, vector<16x128xf32>
    %20 = arith.mulf %5, %19 : vector<16x128xf32>
    %21 = arith.addf %3, %20 : vector<16x128xf32>
    %c0_7 = arith.constant 0 : index
    %c0_8 = arith.constant 0 : index
    %22 = vector.load %arg4[%c0_7, %c0_8] : memref<16x128xf32, #tpu.memory_space<vmem>>, vector<16x128xf32>
    tpu.vector_store %arg4[%c0_7, %c0_8], %21 {strides = array<i32>} : memref<16x128xf32, #tpu.memory_space<vmem>>, vector<16x128xf32>,
    return
  }
  func.func @transform_0(%arg0: i32) -> (i32, i32) {
    %c0_i32 = arith.constant 0 : i32
    %c0_i32_0 = arith.constant 0 : i32
    return %arg0, %c0_i32 : i32, i32
  }
  func.func @transform_1(%arg0: i32) -> (i32, i32) {
    %c0_i32 = arith.constant 0 : i32
    %c0_i32_0 = arith.constant 0 : i32
    %c0_i32_1 = arith.constant 0 : i32
    return %c0_i32, %c0_i32_0 : i32, i32
  }
  func.func @transform_2(%arg0: i32) -> (i32, i32) {
    %c0_i32 = arith.constant 0 : i32
    %c0_i32_0 = arith.constant 0 : i32
    return %arg0, %c0_i32 : i32, i32
  }
  func.func @transform_3(%arg0: i32) -> (i32, i32) {
    %c0_i32 = arith.constant 0 : i32
    %c0_i32_0 = arith.constant 0 : i32
    return %arg0, %c0_i32 : i32, i32
  }
}

</mosaic_0001>

<bundles_post_ra>
// kernel: tpu_custom_call.1
= control target key start
LH: loop header
LB: loop body
LE: loop exit
PB: predicated region body
PF: predicated region fallthrough
CT: control target
= control target key end

     0   :  { %8 = vsyncpa [#allocation3], 0  ;;  %s384_s0 = inlined_call_operand.hbm [shape: bf16[16,32], index: 0, kind: input, shape index: {}]   ;;  %s385_s1 = inlined_call_operand.hbm [shape: bf16[32,256], index: 1, kind: input, shape index: {}]   ;;  %s386_s2 = inlined_call_operand.hbm [shape: f32[16,128], index: 2, kind: input, shape index: {}]   ;;  %s387_s3 = inlined_call_operand.hbm [shape: f32[16,128], index: 3, kind: output, shape index: {}]  }
   0x1   :  { %9 = vsyncpa [#allocation6], 0  ;;  %s28_s14 = sshll.u32 %s385_s1, 4  ;;  %s29_s14 = int_to_ptr.hbm [resolvable:$true] %s28_s14 }
   0x2   :  { %10 = vsyncpa [#allocation4], 0  ;;  %s335_s15 = smov [#allocation5]   ;;  %s15_s19 = sshll.u32 %s384_s0, 4  ;;  %s16_s19 = int_to_ptr.hbm [resolvable:$true] %s15_s19 }
   0x3   :  { %s30_s16 = sshll.u32 %s335_s15, 4  ;;  %s336_s20 = smov 128   ;;  %s31_s16 = int_to_ptr.vmem [resolvable:$true] %s30_s16 }
   0x4   :  { %s337_s21 = smov 8   ;;  %s338_s22 = smov [#allocation2]  }
   0x5   :  { %36 = dma.hbm_to_vmem [thread:$0]  %s29_s14, 512, %s31_s16, [#allocation6], %s336_s20, %s336_s20, %s337_s21  }
   0x6   :  { %s17_s23 = sshll.u32 %s338_s22, 4  ;;  %s339_s1 = smov 64   ;;  %s18_s23 = int_to_ptr.vmem [resolvable:$true] %s17_s23 }
   0x7   :  { %s340_s24 = smov 4   ;;  %s41_s27 = sshll.u32 %s386_s2, 4  ;;  %s42_s27 = int_to_ptr.hbm [resolvable:$true] %s41_s27 }
   0x8   :  { %23 = dma.hbm_to_vmem [thread:$0]  %s16_s19, 128, %s18_s23, [#allocation3], %s339_s1, %s339_s1, %s340_s24  }
   0x9   :  { %s341_s28 = smov [#allocation7]  }
   0xa   :  { %s43_s0 = sshll.u32 %s341_s28, 4  ;;  %s44_s0 = int_to_ptr.vmem [resolvable:$true] %s43_s0 }
   0xb   :  { %49 = dma.hbm_to_vmem [thread:$0]  %s42_s27, 256, %s44_s0, [#allocation6], %s336_s20, %s336_s20, %s337_s21  }
   0xc   :  { %329 = dma.done.wait [#allocation3], 128  }
   0xd   :  { %330 = vsyncadd [#allocation3], 4294967168 }
   0xe   :  { %331 = dma.done.wait [#allocation6], 768  }
   0xf   :  { %332 = vsyncadd [#allocation6], 4294966528  ;;  %v215_v0 = vld [vmem:[#allocation5 + $0x14] sm:$0xf]  ;;  %v206_v1 = vld [vmem:[#allocation5 + $0x18] sm:$0xf0] }
  0x10   :  { %v213_v2 = vld [vmem:[#allocation5 + $0x4] sm:$0xf]  ;;  %v209_v3 = vor.u32 %v215_v0, %v206_v1  ;;  %v198_v4 = vld [vmem:[#allocation5 + $0x8] sm:$0xf0]  ;;  %v204_v5 = vld [vmem:[#allocation5 + $0x10] sm:$0xf] }
  0x11   :  { %v216_v6 = vld [vmem:[#allocation5 + $0x14] sm:$0xf0]  ;;  %v196_v7 = vld [vmem:[#allocation5] sm:$0xf]  ;;  %v214_v8 = vld [vmem:[#allocation5 + $0x4] sm:$0xf0]  ;;  %v201_v9 = vor.u32 %v213_v2, %v198_v4 }
  0x12   :  { %118 = vmatpush.bf16.msra.mxu1 %v209_v3  ;;  %v205_v10 = vor.u32 %v216_v6, %v204_v5  ;;  %v197_v11 = vor.u32 %v214_v8, %v196_v7  ;;  %v212_v12 = vld [vmem:[#allocation2] sm:$0xff]  ;;  %vm94_vm0 = vcmask 261120   ;;  %v126_v35 = vld [vmem:[#allocation7] sm:$0xff]  ;;  %v127_v48 = vld [vmem:[#allocation7 + $0x8] sm:$0xff]  ;;  %s342_s2 = smov [#allocation8]   ;;  %s176_s5 = sshll.u32 %s387_s3, 4  ;;  %s177_s5 = int_to_ptr.hbm [resolvable:$true] %s176_s5 }
  0x13   :  { %s174_s29 = sshll.u32 %s342_s2, 4  ;;  %s175_s29 = int_to_ptr.vmem [resolvable:$true] %s174_s29 }
  0x14   :  { %104 = vmatpush.bf16.msra.mxu0 %v205_v10 }
  0x16   :  { %119 = vmatpush.bf16.msra.mxu1 %v201_v9 }
  0x18   :  { %105 = vmatpush.bf16.msra.mxu0 %v197_v11 }
  0x19   :  { %211 = vmatmul.msk.bf16.vlgmr.msra.gmra.mxu1 %vm94_vm0, %v212_v12 }
  0x1b   :  { %210 = vmatmul.msk.bf16.vlgmr.msra.gmra.mxu0 %vm94_vm0, %v212_v12 }
  0x96   :  { %v121_v13 = vpop.f32.mrf.mxu1 }
  0x97   :  { %v134_v14 = vand.u32 2147483647, %v121_v13  ;;  %v128_v32 = vmax.f32 %v121_v13, 0.0  ;;  %vm130_vm2 = vcmp.ne.f32.partialorder %v121_v13, %v121_v13 }
  0x98   :  { %v107_v38 = vpop.f32.mrf.mxu0 }
  0x99   :  { %v136_v15 = vsub.f32 0.0, %v134_v14 }
  0x9b   :  { %v138_v16 = vmul.f32 1.442695, %v136_v15 }
  0x9d   :  { %225 = vpow2.f32 %v138_v16 }
  0x9e   :  { %v123_v17 = vpop.f32.mrf.mxu1 }
  0x9f   :  { %v135_v18 = vand.u32 2147483647, %v123_v17  ;;  %v129_v45 = vmax.f32 %v123_v17, 0.0  ;;  %vm131_vm4 = vcmp.ne.f32.partialorder %v123_v17, %v123_v17 }
  0xa0   :  { %v109_v51 = vpop.f32.mrf.mxu0 }
  0xa1   :  { %v137_v19 = vsub.f32 0.0, %v135_v18 }
  0xa3   :  { %v226_v20 = vpop.eup %225  ;;  %v140_v21 = vmul.f32 1.442695, %v137_v19 }
  0xa4   :  { %v142_v22 = vadd.f32 1.0, %v226_v20  ;;  %v145_v23 = vmul.f32 -0.5, %v226_v20  ;;  %v148_v25 = vand.u32 2147483647, %v226_v20 }
  0xa5   :  { %227 = vpow2.f32 %v140_v21 }
  0xa6   :  { %229 = vlog2.f32 %v142_v22  ;;  %v146_v24 = vadd.f32 1.0, %v145_v23  ;;  %vm149_vm1 = vcmp.lt.f32.partialorder %v148_v25, 0.0004427343 }
  0xa8   :  { %v147_v30 = vmul.f32 %v226_v20, %v146_v24 }
  0xab   :  { %v228_v26 = vpop.eup %227 }
  0xac   :  { %v230_v27 = vpop.eup %229  ;;  %v151_v28 = vadd.f32 1.0, %v228_v26  ;;  %v154_v31 = vmul.f32 -0.5, %v228_v26  ;;  %v157_v37 = vand.u32 2147483647, %v228_v26 }
  0xad   :  { %v144_v29 = vmul.f32 0.6931472, %v230_v27 }
  0xae   :  { %231 = vlog2.f32 %v151_v28  ;;  %v155_v36 = vadd.f32 1.0, %v154_v31  ;;  %vm158_vm3 = vcmp.lt.f32.partialorder %v157_v37, 0.0004427343 }
  0xaf   :  { %v150_v33 = vsel %vm149_vm1, %v147_v30, %v144_v29 }
  0xb0   :  { %v160_v34 = vadd.f32 %v150_v33, %v128_v32  ;;  %v156_v43 = vmul.f32 %v228_v26, %v155_v36 }
  0xb2   :  { %v162_v39 = vsel %vm130_vm2, %v121_v13, %v160_v34 }
  0xb3   :  { %v164_v40 = vmul.f32 %v162_v39, %v126_v35 }
  0xb4   :  { %v232_v41 = vpop.eup %231 }
  0xb5   :  { %v153_v42 = vmul.f32 0.6931472, %v232_v41  ;;  %v166_v44 = vadd.f32 %v164_v40, %v107_v38 }
  0xb7   :  { %v159_v46 = vsel %vm158_vm3, %v156_v43, %v153_v42  ;;  %168 = vst [vmem:[#allocation8] sm:$0xff] %v166_v44 }
  0xb8   :  { %v161_v47 = vadd.f32 %v159_v46, %v129_v45 }
  0xba   :  { %v163_v49 = vsel %vm131_vm4, %v123_v17, %v161_v47 }
  0xbb   :  { %v165_v50 = vmul.f32 %v163_v49, %v127_v48 }
  0xbd   :  { %v167_v52 = vadd.f32 %v165_v50, %v109_v51 }
  0xbf   :  { %169 = vst [vmem:[#allocation8 + $0x8] sm:$0xff] %v167_v52 }
  0xc0   :  { %182 = dma.vmem_to_hbm [thread:$0]  %s175_s29, 256, %s177_s5, [#allocation4], %s336_s20, %s336_s20, %s337_s21  }
  0xc1   :  { %333 = dma.done.wait [#allocation4], 256  }
  0xc2   :  { %334 = vsyncadd [#allocation4], 4294967040 }
  0xc3   :  { %187 = vsyncpa [#allocation3], 1 }
  0xc4   :  { %188 = vsyncpa [#allocation6], 1 }
  0xc5   :  { %189 = vsyncpa [#allocation4], 1 }

</bundles_post_ra>
